<compile_context>
chip_gen: v7x
topology: tpu7x:2x2x1
jax: 0.10.0
libtpu: 0.0.40
codegen_flags: <defaults>
</compile_context>

<pallas_src>
import math
import jax
import jax.numpy as jnp
from jax.experimental import pallas as pl
from jax.experimental.pallas import tpu as pltpu


# ---------------------------------------------------------------------------
# Fused Pallas kernel: whole NonlinearGenerativeNet forward for one batch tile
# ---------------------------------------------------------------------------
def _leaky_relu(h, slope=0.3):
    # VPU select; slope 0.3 matches nn.LeakyReLU(0.3)
    return jnp.where(h > 0, h, slope * h)


def _nonlinear_gen_kernel(x_ref, w1_ref, b1_ref, w2_ref, b2_ref,
                          w3_ref, b3_ref, o_ref):
    # x_ref  : (B, D_L)        VMEM
    # w*_ref : (D_in, D_out)   VMEM  (PRE-TRANSPOSED -> direct MXU feed)
    # b*_ref : (1, D_out)      VMEM  (broadcast over batch)
    # o_ref  : (B, D_OBS)      VMEM
    h = 2.0 * x_ref[...] - 1.0                                            # VPU
    h1 = jnp.dot(h, w1_ref[...], preferred_element_type=jnp.float32)      # MXU
    h1 = _leaky_relu(h1 + b1_ref[...])                                    # VPU
    h2 = jnp.dot(h1, w2_ref[...], preferred_element_type=jnp.float32)     # MXU
    h2 = _leaky_relu(h2 + b2_ref[...])                                    # VPU
    logit = jnp.dot(h2, w3_ref[...], preferred_element_type=jnp.float32)  # MXU
    o_ref[...] = (logit + b3_ref[...]).astype(o_ref.dtype)


@jax.jit
def nonlinear_generative_forward(x0, w1t, b1, w2t, b2, w3t, b3):
    """[logit] of NonlinearGenerativeNet, fused into one pallas_call."""
    B, _ = x0.shape
    d_obs = w3t.shape[1]
    vmem = pl.BlockSpec(memory_space=pltpu.MemorySpace.VMEM)
    logit = pl.pallas_call(
        _nonlinear_gen_kernel,
        out_shape=jax.ShapeDtypeStruct((B, d_obs), jnp.float32),
        in_specs=[vmem] * 7,
        out_specs=vmem,
    )(x0, w1t, b1.reshape(1, -1), w2t, b2.reshape(1, -1), w3t, b3.reshape(1, -1))
    return logit


# ---------------------------------------------------------------------------
# Module wrapper mirroring the PyTorch __init__ / forward
# ---------------------------------------------------------------------------
class NonlinearGenerativeNetPallas:
    def __init__(self, dim_observed, dim_latent, key, bias_init=None):
        def linear_init(k, d_in, d_out):
            kw, kb = jax.random.split(k)
            bound = 1.0 / math.sqrt(d_in)   # PyTorch nn.Linear default init
            w = jax.random.uniform(kw, (d_out, d_in), jnp.float32, -bound, bound)
            b = jax.random.uniform(kb, (d_out,), jnp.float32, -bound, bound)
            return w, b

        k1, k2, k3 = jax.random.split(key, 3)
        w1, b1 = linear_init(k1, dim_latent, dim_latent)      # dec_fc1
        w2, b2 = linear_init(k2, dim_latent, dim_latent)      # dec_fc2
        w3, b3 = linear_init(k3, dim_latent, dim_observed)    # dec_fc3
        if bias_init is not None:
            b3 = jnp.asarray(bias_init, jnp.float32)           # bias_init override

        # One-time layout plumbing: store weights pre-transposed (D_in, D_out)
        # so the kernel never transposes on the XLU path.
        self.w1t, self.b1 = w1.T, b1
        self.w2t, self.b2 = w2.T, b2
        self.w3t, self.b3 = w3.T, b3
        # PyTorch-layout copies kept only for the pure-JAX reference check.
        self.torch_params = [(w1, b1), (w2, b2), (w3, b3)]

    def forward(self, x):
        # x is a stack of inputs; only x[0] is consumed (mirrors PyTorch).
        logit = nonlinear_generative_forward(
            x[0], self.w1t, self.b1, self.w2t, self.b2, self.w3t, self.b3)
        return [logit]


# ---------------------------------------------------------------------------
# Pure-JAX reference (matches the PyTorch forward exactly)
# ---------------------------------------------------------------------------
def reference_forward(x, torch_params):
    (w1, b1), (w2, b2), (w3, b3) = torch_params
    lrelu = lambda h: jnp.where(h > 0, h, 0.3 * h)
    h1 = lrelu((2.0 * x[0] - 1.0) @ w1.T + b1)
    h2 = lrelu(h1 @ w2.T + b2)
    return [h2 @ w3.T + b3]


if __name__ == "__main__":
    key = jax.random.PRNGKey(0)

    B = 8                # batch
    DIM_LATENT = 32      # dec_fc1 / dec_fc2 width
    DIM_OBSERVED = 128   # output width -> lane-dense (full 128-lane) stores

    # deterministic bias_init for dec_fc3 (mirrors the bias_init kwarg)
    bias_init = jnp.linspace(-0.5, 0.5, DIM_OBSERVED, dtype=jnp.float32)

    key, knet, kx = jax.random.split(key, 3)
    net = NonlinearGenerativeNetPallas(
        DIM_OBSERVED, DIM_LATENT, knet, bias_init=bias_init)

    # Stacked input; forward consumes x[0] just like the PyTorch module.
    x = jax.random.normal(kx, (2, B, DIM_LATENT), dtype=jnp.float32)

    logits = net.forward(x)
    logits = [jax.block_until_ready(l) for l in logits]

    ref = reference_forward(x, net.torch_params)
    for got, want in zip(logits, ref):
        assert got.shape == want.shape, f"shape {got.shape} vs {want.shape}"
        assert jnp.allclose(got, want, atol=1e-4, rtol=1e-4), "mismatch vs reference"

    print("KERNEL_OK")
</pallas_src>

<mosaic_0001>
module attributes {stable_mosaic.version = 11 : i64} {
  func.func @_nonlinear_gen_kernel(%arg0: memref<8x32xf32, #tpu.memory_space<vmem>>, %arg1: memref<32x32xf32, #tpu.memory_space<vmem>>, %arg2: memref<1x32xf32, #tpu.memory_space<vmem>>, %arg3: memref<32x32xf32, #tpu.memory_space<vmem>>, %arg4: memref<1x32xf32, #tpu.memory_space<vmem>>, %arg5: memref<32x128xf32, #tpu.memory_space<vmem>>, %arg6: memref<1x128xf32, #tpu.memory_space<vmem>>, %arg7: memref<8x128xf32, #tpu.memory_space<vmem>>) attributes {dimension_semantics = [], scalar_prefetch = 0 : i64, scratch_operands = 0 : i64, tpu.core_type = #tpu.core_type<tc>} {
    %c0 = arith.constant 0 : index
    %c0_0 = arith.constant 0 : index
    %0 = vector.load %arg0[%c0, %c0_0] : memref<8x32xf32, #tpu.memory_space<vmem>>, vector<8x32xf32>
    %cst = arith.constant 2.000000e+00 : f32
    %1 = vector.broadcast %cst : f32 to vector<8x32xf32>
    %2 = arith.mulf %1, %0 : vector<8x32xf32>
    %cst_1 = arith.constant 1.000000e+00 : f32
    %3 = vector.broadcast %cst_1 : f32 to vector<8x32xf32>
    %4 = arith.subf %2, %3 : vector<8x32xf32>
    %c0_2 = arith.constant 0 : index
    %c0_3 = arith.constant 0 : index
    %5 = vector.load %arg1[%c0_2, %c0_3] : memref<32x32xf32, #tpu.memory_space<vmem>>, vector<32x32xf32>
    %cst_4 = arith.constant dense<0.000000e+00> : vector<8x32xf32>
    %6 = tpu.matmul %4, %5, %cst_4 {dimension_numbers = #tpu.dot_dimension_numbers<[1], [0], [0], [1], [0, 0, 1, 1], [], []>} : vector<8x32xf32>, vector<32x32xf32>, vector<8x32xf32> -> vector<8x32xf32>
    %c0_5 = arith.constant 0 : index
    %c0_6 = arith.constant 0 : index
    %7 = vector.load %arg2[%c0_5, %c0_6] : memref<1x32xf32, #tpu.memory_space<vmem>>, vector<1x32xf32>
    %8 = vector.broadcast %7 : vector<1x32xf32> to vector<8x32xf32>
    %9 = arith.addf %6, %8 : vector<8x32xf32>
    %cst_7 = arith.constant 0.000000e+00 : f32
    %10 = vector.broadcast %cst_7 : f32 to vector<8x32xf32>
    %11 = arith.cmpf ogt, %9, %10 : vector<8x32xf32>
    %cst_8 = arith.constant 3.000000e-01 : f32
    %12 = vector.broadcast %cst_8 : f32 to vector<8x32xf32>
    %13 = arith.mulf %12, %9 : vector<8x32xf32>
    %14 = arith.select %11, %9, %13 : vector<8x32xi1>, vector<8x32xf32>
    %c0_9 = arith.constant 0 : index
    %c0_10 = arith.constant 0 : index
    %15 = vector.load %arg3[%c0_9, %c0_10] : memref<32x32xf32, #tpu.memory_space<vmem>>, vector<32x32xf32>
    %cst_11 = arith.constant dense<0.000000e+00> : vector<8x32xf32>
    %16 = tpu.matmul %14, %15, %cst_11 {dimension_numbers = #tpu.dot_dimension_numbers<[1], [0], [0], [1], [0, 0, 1, 1], [], []>} : vector<8x32xf32>, vector<32x32xf32>, vector<8x32xf32> -> vector<8x32xf32>
    %c0_12 = arith.constant 0 : index
    %c0_13 = arith.constant 0 : index
    %17 = vector.load %arg4[%c0_12, %c0_13] : memref<1x32xf32, #tpu.memory_space<vmem>>, vector<1x32xf32>
    %18 = vector.broadcast %17 : vector<1x32xf32> to vector<8x32xf32>
    %19 = arith.addf %16, %18 : vector<8x32xf32>
    %cst_14 = arith.constant 0.000000e+00 : f32
    %20 = vector.broadcast %cst_14 : f32 to vector<8x32xf32>
    %21 = arith.cmpf ogt, %19, %20 : vector<8x32xf32>
    %cst_15 = arith.constant 3.000000e-01 : f32
    %22 = vector.broadcast %cst_15 : f32 to vector<8x32xf32>
    %23 = arith.mulf %22, %19 : vector<8x32xf32>
    %24 = arith.select %21, %19, %23 : vector<8x32xi1>, vector<8x32xf32>
    %c0_16 = arith.constant 0 : index
    %c0_17 = arith.constant 0 : index
    %25 = vector.load %arg5[%c0_16, %c0_17] : memref<32x128xf32, #tpu.memory_space<vmem>>, vector<32x128xf32>
    %cst_18 = arith.constant dense<0.000000e+00> : vector<8x128xf32>
    %26 = tpu.matmul %24, %25, %cst_18 {dimension_numbers = #tpu.dot_dimension_numbers<[1], [0], [0], [1], [0, 0, 1, 1], [], []>} : vector<8x32xf32>, vector<32x128xf32>, vector<8x128xf32> -> vector<8x128xf32>
    %c0_19 = arith.constant 0 : index
    %c0_20 = arith.constant 0 : index
    %27 = vector.load %arg6[%c0_19, %c0_20] : memref<1x128xf32, #tpu.memory_space<vmem>>, vector<1x128xf32>
    %28 = vector.broadcast %27 : vector<1x128xf32> to vector<8x128xf32>
    %29 = arith.addf %26, %28 : vector<8x128xf32>
    %c0_21 = arith.constant 0 : index
    %c0_22 = arith.constant 0 : index
    %30 = vector.load %arg7[%c0_21, %c0_22] : memref<8x128xf32, #tpu.memory_space<vmem>>, vector<8x128xf32>
    tpu.vector_store %arg7[%c0_21, %c0_22], %29 {strides = array<i32>} : memref<8x128xf32, #tpu.memory_space<vmem>>, vector<8x128xf32>,
    return
  }
}

</mosaic_0001>

<bundles_post_ra>
// kernel: nonlinear_generative_forward.1
= control target key start
LH: loop header
LB: loop body
LE: loop exit
PB: predicated region body
PF: predicated region fallthrough
CT: control target
= control target key end

     0   :  { %12 = vsyncpa [#allocation3], 0  ;;  %s654_s0 = inlined_call_operand.vmem [shape: f32[8,32], index: 0, kind: input, shape index: {}]   ;;  %s655_s1 = inlined_call_operand.hbm [shape: f32[32,32], index: 1, kind: input, shape index: {}]   ;;  %s656_s2 = inlined_call_operand.vmem [shape: f32[1,32], index: 2, kind: input, shape index: {}]   ;;  %s657_s3 = inlined_call_operand.hbm [shape: f32[32,32], index: 3, kind: input, shape index: {}]   ;;  %s658_s4 = inlined_call_operand.vmem [shape: f32[1,32], index: 4, kind: input, shape index: {}]   ;;  %s659_s5 = inlined_call_operand.hbm [shape: f32[32,128], index: 5, kind: input, shape index: {}]   ;;  %s660_s6 = inlined_call_operand.vmem [shape: f32[1,128], index: 6, kind: input, shape index: {}]   ;;  %s661_s7 = inlined_call_operand.hbm [shape: f32[8,128], index: 7, kind: output, shape index: {}]  }
   0x1   :  { %13 = vsyncpa [#allocation6], 0 }
   0x2   :  { %14 = vsyncpa [#allocation4], 0  ;;  %s523_s24 = smov [#allocation5]   ;;  %s524_s26 = smov [#allocation2]  }
   0x3   :  { %s36_s25 = sshll.u32 %s523_s24, 4  ;;  %s22_s27 = sshll.u32 %s524_s26, 4  ;;  %s37_s25 = int_to_ptr.vmem [resolvable:$true] %s36_s25  ;;  %s572_s27 = int_to_ptr.vmem [resolvable:$true] %s22_s27 }
   0x4   :  { %s429_s30 = scalar_lea.hbm %s657_s3, 512 }
   0x5   :  { %p430_p0 = scmp.ne.s32.totalorder %s657_s3, %s429_s30  ;;  %p433_p1 = scmp.lt.u32.totalorder %s429_s30, %s657_s3 }
   0x7   :  { %p435_p2 = pnand %p433_p1, %p430_p0 }
   0x9   :  { %438 = shalt.err (!%p435_p2)
}
   0xa   :  { %s439_s12 = scalar_lea.vmem %s37_s25, 512  ;;  %p444_p4 = scmp.lt.s32.totalorder %s37_s25, %s37_s25 }
   0xb   :  { %p440_p3 = scmp.ne.s32.totalorder %s37_s25, %s439_s12  ;;  %p445_p5 = scmp.lt.s32.totalorder %s439_s12, %s439_s12 }
   0xd   :  { %p446_p6 = por %p445_p5, %p444_p4 }
   0xf   :  { %p447_p7 = pnand %p446_p6, %p440_p3 }
  0x11   :  { %450 = shalt.err (!%p447_p7)
}
  0x12   :  { %s525_s13 = smov 128   ;;  %s526_s14 = smov 8  }
  0x13   :  { %42 = dma.hbm_to_vmem [thread:$0]  %s657_s3, 512, %s37_s25, [#allocation6], %s525_s13, %s525_s13, %s526_s14  }
  0x14   :  { %s451_s19 = scalar_lea.hbm %s655_s1, 512 }
  0x15   :  { %p452_p8 = scmp.ne.s32.totalorder %s655_s1, %s451_s19  ;;  %p455_p9 = scmp.lt.u32.totalorder %s451_s19, %s655_s1 }
  0x17   :  { %p457_p10 = pnand %p455_p9, %p452_p8 }
  0x19   :  { %460 = shalt.err (!%p457_p10)
}
  0x1a   :  { %s461_s24 = scalar_lea.vmem %s572_s27, 512  ;;  %p466_p12 = scmp.lt.s32.totalorder %s572_s27, %s572_s27 }
  0x1b   :  { %p462_p11 = scmp.ne.s32.totalorder %s572_s27, %s461_s24  ;;  %p467_p13 = scmp.lt.s32.totalorder %s461_s24, %s461_s24 }
  0x1d   :  { %p468_p0 = por %p467_p13, %p466_p12 }
  0x1f   :  { %p469_p1 = pnand %p468_p0, %p462_p11 }
  0x21   :  { %472 = shalt.err (!%p469_p1)
}
  0x22   :  { %28 = dma.hbm_to_vmem [thread:$0]  %s655_s1, 512, %s572_s27, [#allocation3], %s525_s13, %s525_s13, %s526_s14  }
  0x23   :  { %s527_s26 = smov [#allocation7]   ;;  %s473_s8 = scalar_lea.hbm %s659_s5, 512 }
  0x24   :  { %s50_s28 = sshll.u32 %s527_s26, 4  ;;  %p474_p2 = scmp.ne.s32.totalorder %s659_s5, %s473_s8  ;;  %s51_s28 = int_to_ptr.vmem [resolvable:$true] %s50_s28 }
  0x25   :  { %p477_p3 = scmp.lt.u32.totalorder %s473_s8, %s659_s5 }
  0x27   :  { %p479_p4 = pnand %p477_p3, %p474_p2 }
  0x29   :  { %482 = shalt.err (!%p479_p4)
}
  0x2a   :  { %s483_s15 = scalar_lea.vmem %s51_s28, 512  ;;  %p488_p6 = scmp.lt.s32.totalorder %s51_s28, %s51_s28 }
  0x2b   :  { %p484_p5 = scmp.ne.s32.totalorder %s51_s28, %s483_s15  ;;  %p489_p7 = scmp.lt.s32.totalorder %s483_s15, %s483_s15 }
  0x2d   :  { %p490_p8 = por %p489_p7, %p488_p6 }
  0x2f   :  { %p491_p9 = pnand %p490_p8, %p484_p5 }
  0x31   :  { %494 = shalt.err (!%p491_p9)
}
  0x32   :  { %56 = dma.hbm_to_vmem [thread:$0]  %s659_s5, 512, %s51_s28, [#allocation6], %s525_s13, %s525_s13, %s526_s14  }
  0x33   :  { %517 = dma.done.wait [#allocation3], 512  }
  0x34   :  { %518 = vsyncadd [#allocation3], 4294966784 }
  0x35   :  { %519 = dma.done.wait [#allocation6], 1024  }
  0x36   :  { %520 = vsyncadd [#allocation6], 4294966272  ;;  %v528_v0 = vmov 0.0|0.0   ;;  %vm529_vm0 = vmmov 0   ;;  %v530_v1 = vmov 0.0   ;;  %v71_v2 = vld [vmem:[#allocation2] sm:$0xff] }
  0x37   :  { %402 = vmatprep.subr.bf16.mxu0 %v528_v0  ;;  %377 = vmatprep.mubr.msk.f32.mxu0 %vm529_vm0, %v530_v1  ;;  %v72_v3 = vld [vmem:[#allocation2 + $0x8] sm:$0xff]  ;;  %v73_v4 = vld [vmem:[#allocation2 + $0x10] sm:$0xff]  ;;  %v74_v6 = vld [vmem:[#allocation2 + $0x18] sm:$0xff]  ;;  %vm82_vm1 = vcmask 261120   ;;  %s531_s19 = smov [#allocation8]  }
  0x38   :  { %408 = vmatprep.subr.bf16.mxu1 %v528_v0  ;;  %388 = vmatprep.mubr.msk.f32.mxu1 %vm529_vm0, %v530_v1  ;;  %v403_v5 = vpack.c.bf16 %v72_v3, %v71_v2  ;;  %v68_v7 = vld [vmem:[%s654_s0] sm:$0xff]  ;;  %v160_v10 = vld [vmem:[#allocation5 + $0x8] sm:$0xff]  ;;  %v406_v11 = vpack.c.bf16 %v74_v6, %v73_v4  ;;  %v161_v14 = vld [vmem:[#allocation5 + $0x10] sm:$0xff]  ;;  %s337_s20 = sshll.u32 %s531_s19, 4  ;;  %s338_s20 = int_to_ptr.vmem [resolvable:$true] %s337_s20 }
  0x39   :  { %v159_v8 = vld [vmem:[#allocation5] sm:$0xff]  ;;  %v69_v9 = vmul.f32 2.0, %v68_v7  ;;  %v162_v15 = vld [vmem:[#allocation5 + $0x18] sm:$0xff]  ;;  %v247_v18 = vld [vmem:[#allocation7 + $0x8] sm:$0xff]  ;;  %p500_p11 = scmp.lt.s32.totalorder %s338_s20, %s338_s20 }
  0x3a   :  { %404 = vmatpush3.bf16.msra.mxu0 %v403_v5  ;;  %v409_v12 = vpack.c.bf16 %v160_v10, %v159_v8  ;;  %v412_v16 = vpack.c.bf16 %v162_v15, %v161_v14  ;;  %v246_v17 = vld [vmem:[#allocation7] sm:$0xff]  ;;  %v248_v26 = vld [vmem:[#allocation7 + $0x10] sm:$0xff]  ;;  %v249_v27 = vld [vmem:[#allocation7 + $0x18] sm:$0xff] }
  0x3b   :  { %405 = vmatprep.subr.bf16.mxu0 %v528_v0  ;;  %v347_v13 = vadd.f32 -1.0, %v69_v9  ;;  %v415_v19 = vpack.c.bf16 %v247_v18, %v246_v17  ;;  %v348_v20 = vld [vmem:[%s656_s2] ss:$0 sm:$0xff]  ;;  %v418_v28 = vpack.c.bf16 %v249_v27, %v248_v26 }
  0x3c   :  { %410 = vmatpush3.bf16.msra.mxu1 %v409_v12  ;;  %v350_v29 = vld [vmem:[%s658_s4] ss:$0 sm:$0xff]  ;;  %s495_s4 = scalar_lea.vmem %s338_s20, 128 }
  0x3d   :  { %411 = vmatprep.subr.bf16.mxu1 %v528_v0  ;;  %v352_v35 = vld [vmem:[%s660_s6] ss:$0 sm:$0xff]  ;;  %p496_p10 = scmp.ne.s32.totalorder %s338_s20, %s495_s4  ;;  %p501_p12 = scmp.lt.s32.totalorder %s495_s4, %s495_s4 }
  0x3e   :  { %407 = vmatpush3.bf16.msra.mxu0 %v406_v11 }
  0x3f   :  { %414 = vmatprep.subr.bf16.mxu0 %v528_v0  ;;  %p502_p13 = por %p501_p12, %p500_p11 }
  0x40   :  { %413 = vmatpush3.bf16.msra.mxu1 %v412_v16 }
  0x41   :  { %378 = vmatmul.mubr.msk.f32.vlgmr.msra.gmra.mrb[0].mxu0 %vm82_vm1, %v347_v13  ;;  %p503_p0 = pnand %p502_p13, %p496_p10 }
  0x42   :  { %399 = vmatprep.mubr.msk.f32.mxu0 %vm529_vm0, %v530_v1  ;;  %416 = vmatpush3.bf16.msra.mxu0 %v415_v19 }
  0x43   :  { %417 = vmatprep.subr.bf16.mxu0 %v528_v0 }
  0x46   :  { %419 = vmatpush3.bf16.msra.mxu0 %v418_v28 }
 0x114   :  { %v152_v21 = vpop.f32.mrb[0].mxu0 }
 0x115   :  { %v153_v22 = vadd.f32 %v348_v20, %v152_v21  ;;  %v379_v23 = vpop.f32.mrb[1].mxu0 }
 0x117   :  { %vm156_vm2 = vcmp.gt.f32.partialorder %v153_v22, 0.0  ;;  %v157_v24 = vmul.f32 0.3, %v153_v22 }
 0x119   :  { %v158_v25 = vsel %vm156_vm2, %v153_v22, %v157_v24 }
 0x11a   :  { %389 = vmatmul.mubr.msk.f32.vlgmr.msra.gmra.mrb[0].mxu1 %vm82_vm1, %v158_v25 }
 0x1ed   :  { %v239_v30 = vpop.f32.mrb[0].mxu1 }
 0x1ee   :  { %v240_v31 = vadd.f32 %v350_v29, %v239_v30  ;;  %v390_v32 = vpop.f32.mrb[1].mxu1 }
 0x1f0   :  { %vm243_vm3 = vcmp.gt.f32.partialorder %v240_v31, 0.0  ;;  %v244_v33 = vmul.f32 0.3, %v240_v31 }
 0x1f2   :  { %v245_v34 = vsel %vm243_vm3, %v240_v31, %v244_v33 }
 0x1f3   :  { %400 = vmatmul.mubr.msk.f32.vlgmr.msra.gmra.mrb[2].mxu0 %vm82_vm1, %v245_v34 }
 0x2c6   :  { %v326_v36 = vpop.f32.mrb[2].mxu0 }
 0x2c7   :  { %v327_v37 = vadd.f32 %v352_v35, %v326_v36  ;;  %v401_v38 = vpop.f32.mrb[3].mxu0 }
 0x2c9   :  { %330 = vst [vmem:[#allocation8] sm:$0xff] %v327_v37 }
 0x2ca   :  { %506 = shalt.err (!%p503_p0)
}
 0x2cb   :  { %s507_s23 = scalar_lea.hbm %s661_s7, 128 }
 0x2cc   :  { %p508_p1 = scmp.ne.s32.totalorder %s661_s7, %s507_s23  ;;  %p511_p2 = scmp.lt.u32.totalorder %s507_s23, %s661_s7 }
 0x2ce   :  { %p513_p3 = pnand %p511_p2, %p508_p1 }
 0x2d0   :  { %516 = shalt.err (!%p513_p3)
}
 0x2d1   :  { %340 = dma.vmem_to_hbm [thread:$0]  %s338_s20, 128, %s661_s7, [#allocation4]  }
 0x2d2   :  { %521 = dma.done.wait [#allocation4], 128  }
 0x2d3   :  { %522 = vsyncadd [#allocation4], 4294967168 }
 0x2d4   :  { %344 = vsyncpa [#allocation3], 1 }
 0x2d5   :  { %345 = vsyncpa [#allocation6], 1 }
 0x2d6   :  { %346 = vsyncpa [#allocation4], 1 }

</bundles_post_ra>
